<compile_context>
chip_gen: v5e
topology: v5e:2x2
jax: 0.10.0
libtpu: 0.0.40
codegen_flags: <defaults>
</compile_context>

<pallas_src>
import math

import jax
import jax.numpy as jnp
from jax.experimental import pallas as pl
from jax.experimental.pallas import tpu as pltpu
from jax.scipy.linalg import block_diag

STATE_DIM = 6
ACTION_DIM = 3
CONTEXT_DIM = 8
LOCAL_CONTEXT_DIM = 4
EMBED_DIM = 32
HIDDEN = 200          # MLP hidden width (big_nets=False -> one hidden layer)
BATCH = 8
PACKED_IN = 32        # ctx(8)+u(3)+lctx(4)+x(6)=21, zero-padded to 32


def _softplus(x):
    # Numerically-stable softplus, matches F.softplus for moderate x.
    return jnp.maximum(x, 0.0) + jnp.log(1.0 + jnp.exp(-jnp.abs(x)))


# ---------------------------------------------------------------------------
# Pallas kernel: whole forward pass, 6 fused matmuls, everything in VMEM.
# ---------------------------------------------------------------------------
def gru_transition_kernel(inp_ref, w1_ref, b1_ref, w2_ref, b2_ref,
                          wih_ref, bih_ref, whh_ref, bhh_ref,
                          wh0_ref, bh0_ref, wh1_ref, bh1_ref, out_ref):
    E, S = EMBED_DIM, STATE_DIM
    dot = lambda a, b: jnp.dot(a, b, preferred_element_type=jnp.float32)
    relu = lambda v: jnp.maximum(v, 0.0)

    # --- fused embed nets -------------------------------------------------
    # layer 1 (block-diagonal): [B,32] @ [32,800] -> all four 200-wide hiddens
    h = relu(dot(inp_ref[...], w1_ref[...]) + b1_ref[...])
    # layer 2 (block-diagonal): [B,800] @ [800,128] -> (ctx|action|lctx|state) embeds
    z2 = dot(h, w2_ref[...]) + b2_ref[...]
    lane = jax.lax.broadcasted_iota(jnp.int32, z2.shape, 1)
    # lanes [0,96): ReLU (ctx/action/lctx), lanes [96,128): Tanh (state embed = h0)
    embeds = jnp.where(lane < 3 * E, relu(z2), jnp.tanh(z2))
    gru_in = embeds[:, :3 * E]      # [B, 96]  = concat(ctx, action, lctx) embeds
    h0 = embeds[:, 3 * E:]          # [B, 32]  = state embed

    # --- GRU cell (one step), 12 matmuls fused into 2 ----------------------
    gi = dot(gru_in, wih_ref[...]) + bih_ref[...]    # [B, 96]  columns: r | z | n
    gh = dot(h0, whh_ref[...]) + bhh_ref[...]        # [B, 96]
    r = jax.nn.sigmoid(gi[:, :E] + gh[:, :E])
    zg = jax.nn.sigmoid(gi[:, E:2 * E] + gh[:, E:2 * E])
    n = jnp.tanh(gi[:, 2 * E:] + r * gh[:, 2 * E:])  # b_hn stays inside gh (gated by r)
    h1 = (1.0 - zg) * n + zg * h0

    # --- fused decode + covariance heads -----------------------------------
    hh = relu(dot(h1, wh0_ref[...]) + bh0_ref[...])  # [B, 400]
    y = dot(hh, wh1_ref[...]) + bh1_ref[...]         # [B, 12]: mean | cov-logits
    lane_y = jax.lax.broadcasted_iota(jnp.int32, y.shape, 1)
    std = jnp.sqrt(_softplus(y) + 0.01 ** 2)
    out_ref[...] = jnp.where(lane_y < S, y, std)     # lanes [0,6)=mean, [6,12)=std


def gru_transition_forward(x, u, ctx, lctx, packed):
    """Single Pallas invocation; returns (mean, std) of the predicted next state."""
    B = x.shape[0]
    # Lane order must match the block-diagonal weight packing: (ctx, u, lctx, x).
    inp = jnp.concatenate([ctx, u, lctx, x], axis=-1)                    # [B, 21]
    inp = jnp.pad(inp, ((0, 0), (0, PACKED_IN - inp.shape[-1])))         # [B, 32]
    vmem = lambda: pl.BlockSpec(memory_space=pltpu.MemorySpace.VMEM)
    out = pl.pallas_call(
        gru_transition_kernel,
        out_shape=jax.ShapeDtypeStruct((B, 2 * STATE_DIM), jnp.float32),
        in_specs=[vmem() for _ in range(1 + len(packed))],
        out_specs=vmem(),
    )(inp, *packed)
    return out[:, :STATE_DIM], out[:, STATE_DIM:]


# ---------------------------------------------------------------------------
# Parameter init (PyTorch-style) and host-side packing into fused buffers.
# ---------------------------------------------------------------------------
def init_params(key):
    """Deterministic uniform(-1/sqrt(fan_in)) init; Linear weights pre-transposed
    to [in, out], biases [1, out]; GRU weights kept in torch layout."""
    keys = iter(jax.random.split(key, 32))

    def torch_linear(fan_in, fan_out):
        bound = 1.0 / math.sqrt(fan_in)
        w = jax.random.uniform(next(keys), (fan_out, fan_in), jnp.float32, -bound, bound)
        b = jax.random.uniform(next(keys), (fan_out,), jnp.float32, -bound, bound)
        return w.T, b.reshape(1, fan_out)

    E, H = EMBED_DIM, HIDDEN
    p = {}
    p['se_w0'], p['se_b0'] = torch_linear(STATE_DIM, H)
    p['se_w1'], p['se_b1'] = torch_linear(H, E)
    p['ae_w0'], p['ae_b0'] = torch_linear(ACTION_DIM, H)
    p['ae_w1'], p['ae_b1'] = torch_linear(H, E)
    p['ce_w0'], p['ce_b0'] = torch_linear(CONTEXT_DIM, H)
    p['ce_w1'], p['ce_b1'] = torch_linear(H, E)
    p['le_w0'], p['le_b0'] = torch_linear(LOCAL_CONTEXT_DIM, H)
    p['le_w1'], p['le_b1'] = torch_linear(H, E)
    p['de_w0'], p['de_b0'] = torch_linear(E, H)
    p['de_w1'], p['de_b1'] = torch_linear(H, STATE_DIM)
    p['hc_w0'], p['hc_b0'] = torch_linear(E, H)
    p['hc_w1'], p['hc_b1'] = torch_linear(H, STATE_DIM)

    # GRUCell (torch layout): weight_ih [3E, 3E], weight_hh [3E, E], biases [3E]
    gbound = 1.0 / math.sqrt(E)
    p['gru_w_ih'] = jax.random.uniform(next(keys), (3 * E, 3 * E), jnp.float32, -gbound, gbound)
    p['gru_w_hh'] = jax.random.uniform(next(keys), (3 * E, E), jnp.float32, -gbound, gbound)
    p['gru_b_ih'] = jax.random.uniform(next(keys), (3 * E,), jnp.float32, -gbound, gbound)
    p['gru_b_hh'] = jax.random.uniform(next(keys), (3 * E,), jnp.float32, -gbound, gbound)
    return p


def pack_params(p):
    """Pack 42 torch tensors into 12 lane-dense fused buffers (one per fused matmul)."""
    E = EMBED_DIM
    # Embed nets, layer 1: block-diagonal over (ctx, action, lctx, state) inputs.
    w1 = block_diag(p['ce_w0'], p['ae_w0'], p['le_w0'], p['se_w0'])      # [21, 800]
    w1 = jnp.pad(w1, ((0, PACKED_IN - w1.shape[0]), (0, 0)))             # [32, 800]
    b1 = jnp.concatenate([p['ce_b0'], p['ae_b0'], p['le_b0'], p['se_b0']], axis=-1)
    # Embed nets, layer 2: block-diagonal -> one [B,128] embed slab.
    w2 = block_diag(p['ce_w1'], p['ae_w1'], p['le_w1'], p['se_w1'])      # [800, 128]
    b2 = jnp.concatenate([p['ce_b1'], p['ae_b1'], p['le_b1'], p['se_b1']], axis=-1)
    # GRU: x @ W_ih.T / h @ W_hh.T with gate columns ordered r | z | n.
    wih = p['gru_w_ih'].T                                                # [96, 96]
    bih = p['gru_b_ih'].reshape(1, 3 * E)
    whh = p['gru_w_hh'].T                                                # [32, 96]
    bhh = p['gru_b_hh'].reshape(1, 3 * E)
    # Heads: shared-input concat for layer 0, block-diagonal for layer 1.
    wh0 = jnp.concatenate([p['de_w0'], p['hc_w0']], axis=1)              # [32, 400]
    bh0 = jnp.concatenate([p['de_b0'], p['hc_b0']], axis=-1)
    wh1 = block_diag(p['de_w1'], p['hc_w1'])                             # [400, 12]
    bh1 = jnp.concatenate([p['de_b1'], p['hc_b1']], axis=-1)
    return (w1, b1, w2, b2, wih, bih, whh, bhh, wh0, bh0, wh1, bh1)


# ---------------------------------------------------------------------------
# Pure-JAX reference (unfused, torch-equivalent math) for correctness checking.
# ---------------------------------------------------------------------------
def reference_forward(x, u, ctx, lctx, p):
    E = EMBED_DIM
    relu = lambda v: jnp.maximum(v, 0.0)
    lin = lambda a, w, b: a @ w + b
    state_embed = jnp.tanh(lin(relu(lin(x, p['se_w0'], p['se_b0'])), p['se_w1'], p['se_b1']))
    action_embed = relu(lin(relu(lin(u, p['ae_w0'], p['ae_b0'])), p['ae_w1'], p['ae_b1']))
    ctx_embed = relu(lin(relu(lin(ctx, p['ce_w0'], p['ce_b0'])), p['ce_w1'], p['ce_b1']))
    lctx_embed = relu(lin(relu(lin(lctx, p['le_w0'], p['le_b0'])), p['le_w1'], p['le_b1']))
    gru_in = jnp.concatenate([ctx_embed, action_embed, lctx_embed], axis=-1)
    gi = gru_in @ p['gru_w_ih'].T + p['gru_b_ih']
    gh = state_embed @ p['gru_w_hh'].T + p['gru_b_hh']
    r = jax.nn.sigmoid(gi[:, :E] + gh[:, :E])
    z = jax.nn.sigmoid(gi[:, E:2 * E] + gh[:, E:2 * E])
    n = jnp.tanh(gi[:, 2 * E:] + r * gh[:, 2 * E:])
    h1 = (1.0 - z) * n + z * state_embed
    mean = lin(relu(lin(h1, p['de_w0'], p['de_b0'])), p['de_w1'], p['de_b1'])
    cov = _softplus(lin(relu(lin(h1, p['hc_w0'], p['hc_b0'])), p['hc_w1'], p['hc_b1'])) + 0.01 ** 2
    return mean, jnp.sqrt(cov)


if __name__ == "__main__":
    key = jax.random.PRNGKey(0)
    kx, ku, kc, kl, kp = jax.random.split(key, 5)

    x = jax.random.normal(kx, (BATCH, STATE_DIM), jnp.float32)
    u = jax.random.normal(ku, (BATCH, ACTION_DIM), jnp.float32)
    ctx_mean = jax.random.normal(kc, (BATCH, CONTEXT_DIM), jnp.float32)
    # torch forward receives local_ctx shaped [T=1, B, local_context_dim]
    local_ctx = jax.random.normal(kl, (1, BATCH, LOCAL_CONTEXT_DIM), jnp.float32)

    raw_params = init_params(kp)
    packed = pack_params(raw_params)

    mean, std = gru_transition_forward(x, u, ctx_mean, local_ctx[0], packed)
    jax.block_until_ready((mean, std))

    # Correctness vs. unfused pure-JAX reference (same math as the torch module).
    ref_mean, ref_std = reference_forward(x, u, ctx_mean, local_ctx[0], raw_params)
    assert mean.shape == (BATCH, STATE_DIM) and std.shape == (BATCH, STATE_DIM)
    assert jnp.allclose(mean, ref_mean, atol=1e-4, rtol=1e-4)
    assert jnp.allclose(std, ref_std, atol=1e-4, rtol=1e-4)

    print("KERNEL_OK")
</pallas_src>

<mosaic_0001>
module attributes {stable_mosaic.version = 11 : i64} {
  func.func @gru_transition_kernel(%arg0: memref<8x32xf32, #tpu.memory_space<vmem>>, %arg1: memref<32x800xf32, #tpu.memory_space<vmem>>, %arg2: memref<1x800xf32, #tpu.memory_space<vmem>>, %arg3: memref<800x128xf32, #tpu.memory_space<vmem>>, %arg4: memref<1x128xf32, #tpu.memory_space<vmem>>, %arg5: memref<96x96xf32, #tpu.memory_space<vmem>>, %arg6: memref<1x96xf32, #tpu.memory_space<vmem>>, %arg7: memref<32x96xf32, #tpu.memory_space<vmem>>, %arg8: memref<1x96xf32, #tpu.memory_space<vmem>>, %arg9: memref<32x400xf32, #tpu.memory_space<vmem>>, %arg10: memref<1x400xf32, #tpu.memory_space<vmem>>, %arg11: memref<400x12xf32, #tpu.memory_space<vmem>>, %arg12: memref<1x12xf32, #tpu.memory_space<vmem>>, %arg13: memref<8x12xf32, #tpu.memory_space<vmem>>) attributes {dimension_semantics = [], scalar_prefetch = 0 : i64, scratch_operands = 0 : i64, tpu.core_type = #tpu.core_type<tc>} {
    %c0 = arith.constant 0 : index
    %c0_0 = arith.constant 0 : index
    %0 = vector.load %arg0[%c0, %c0_0] : memref<8x32xf32, #tpu.memory_space<vmem>>, vector<8x32xf32>
    %c0_1 = arith.constant 0 : index
    %c0_2 = arith.constant 0 : index
    %1 = vector.load %arg1[%c0_1, %c0_2] : memref<32x800xf32, #tpu.memory_space<vmem>>, vector<32x800xf32>
    %cst = arith.constant dense<0.000000e+00> : vector<8x800xf32>
    %2 = tpu.matmul %0, %1, %cst {dimension_numbers = #tpu.dot_dimension_numbers<[1], [0], [0], [1], [0, 0, 1, 1], [], []>} : vector<8x32xf32>, vector<32x800xf32>, vector<8x800xf32> -> vector<8x800xf32>
    %c0_3 = arith.constant 0 : index
    %c0_4 = arith.constant 0 : index
    %3 = vector.load %arg2[%c0_3, %c0_4] : memref<1x800xf32, #tpu.memory_space<vmem>>, vector<1x800xf32>
    %4 = vector.broadcast %3 : vector<1x800xf32> to vector<8x800xf32>
    %5 = arith.addf %2, %4 : vector<8x800xf32>
    %cst_5 = arith.constant 0.000000e+00 : f32
    %6 = vector.broadcast %cst_5 : f32 to vector<8x800xf32>
    %7 = arith.maximumf %5, %6 : vector<8x800xf32>
    %c0_6 = arith.constant 0 : index
    %c0_7 = arith.constant 0 : index
    %8 = vector.load %arg3[%c0_6, %c0_7] : memref<800x128xf32, #tpu.memory_space<vmem>>, vector<800x128xf32>
    %cst_8 = arith.constant dense<0.000000e+00> : vector<8x128xf32>
    %9 = tpu.matmul %7, %8, %cst_8 {dimension_numbers = #tpu.dot_dimension_numbers<[1], [0], [0], [1], [0, 0, 1, 1], [], []>} : vector<8x800xf32>, vector<800x128xf32>, vector<8x128xf32> -> vector<8x128xf32>
    %c0_9 = arith.constant 0 : index
    %c0_10 = arith.constant 0 : index
    %10 = vector.load %arg4[%c0_9, %c0_10] : memref<1x128xf32, #tpu.memory_space<vmem>>, vector<1x128xf32>
    %11 = vector.broadcast %10 : vector<1x128xf32> to vector<8x128xf32>
    %12 = arith.addf %9, %11 : vector<8x128xf32>
    %13 = tpu.iota {dimensions = array<i32: 1>} : vector<8x128xi32>
    %c96_i32 = arith.constant 96 : i32
    %14 = vector.broadcast %c96_i32 : i32 to vector<8x128xi32>
    %15 = arith.cmpi slt, %13, %14 : vector<8x128xi32>
    %cst_11 = arith.constant 0.000000e+00 : f32
    %16 = vector.broadcast %cst_11 : f32 to vector<8x128xf32>
    %17 = arith.maximumf %12, %16 : vector<8x128xf32>
    %18 = math.tanh %12 : vector<8x128xf32>
    %19 = arith.select %15, %17, %18 : vector<8x128xi1>, vector<8x128xf32>
    %20 = vector.extract_strided_slice %19 {offsets = [0, 0], sizes = [8, 96], strides = [1, 1]} : vector<8x128xf32> to vector<8x96xf32>
    %21 = vector.extract_strided_slice %19 {offsets = [0, 96], sizes = [8, 32], strides = [1, 1]} : vector<8x128xf32> to vector<8x32xf32>
    %c0_12 = arith.constant 0 : index
    %c0_13 = arith.constant 0 : index
    %22 = vector.load %arg5[%c0_12, %c0_13] : memref<96x96xf32, #tpu.memory_space<vmem>>, vector<96x96xf32>
    %cst_14 = arith.constant dense<0.000000e+00> : vector<8x96xf32>
    %23 = tpu.matmul %20, %22, %cst_14 {dimension_numbers = #tpu.dot_dimension_numbers<[1], [0], [0], [1], [0, 0, 1, 1], [], []>} : vector<8x96xf32>, vector<96x96xf32>, vector<8x96xf32> -> vector<8x96xf32>
    %c0_15 = arith.constant 0 : index
    %c0_16 = arith.constant 0 : index
    %24 = vector.load %arg6[%c0_15, %c0_16] : memref<1x96xf32, #tpu.memory_space<vmem>>, vector<1x96xf32>
    %25 = vector.broadcast %24 : vector<1x96xf32> to vector<8x96xf32>
    %26 = arith.addf %23, %25 : vector<8x96xf32>
    %c0_17 = arith.constant 0 : index
    %c0_18 = arith.constant 0 : index
    %27 = vector.load %arg7[%c0_17, %c0_18] : memref<32x96xf32, #tpu.memory_space<vmem>>, vector<32x96xf32>
    %cst_19 = arith.constant dense<0.000000e+00> : vector<8x96xf32>
    %28 = tpu.matmul %21, %27, %cst_19 {dimension_numbers = #tpu.dot_dimension_numbers<[1], [0], [0], [1], [0, 0, 1, 1], [], []>} : vector<8x32xf32>, vector<32x96xf32>, vector<8x96xf32> -> vector<8x96xf32>
    %c0_20 = arith.constant 0 : index
    %c0_21 = arith.constant 0 : index
    %29 = vector.load %arg8[%c0_20, %c0_21] : memref<1x96xf32, #tpu.memory_space<vmem>>, vector<1x96xf32>
    %30 = vector.broadcast %29 : vector<1x96xf32> to vector<8x96xf32>
    %31 = arith.addf %28, %30 : vector<8x96xf32>
    %32 = vector.extract_strided_slice %26 {offsets = [0, 0], sizes = [8, 32], strides = [1, 1]} : vector<8x96xf32> to vector<8x32xf32>
    %33 = vector.extract_strided_slice %31 {offsets = [0, 0], sizes = [8, 32], strides = [1, 1]} : vector<8x96xf32> to vector<8x32xf32>
    %34 = arith.addf %32, %33 : vector<8x32xf32>
    %35 = arith.negf %34 : vector<8x32xf32>
    %36 = math.exp %35 : vector<8x32xf32>
    %cst_22 = arith.constant 1.000000e+00 : f32
    %37 = vector.broadcast %cst_22 : f32 to vector<8x32xf32>
    %38 = arith.addf %37, %36 : vector<8x32xf32>
    %39 = arith.divf %37, %38 : vector<8x32xf32>
    %40 = vector.extract_strided_slice %26 {offsets = [0, 32], sizes = [8, 32], strides = [1, 1]} : vector<8x96xf32> to vector<8x32xf32>
    %41 = vector.extract_strided_slice %31 {offsets = [0, 32], sizes = [8, 32], strides = [1, 1]} : vector<8x96xf32> to vector<8x32xf32>
    %42 = arith.addf %40, %41 : vector<8x32xf32>
    %43 = arith.negf %42 : vector<8x32xf32>
    %44 = math.exp %43 : vector<8x32xf32>
    %cst_23 = arith.constant 1.000000e+00 : f32
    %45 = vector.broadcast %cst_23 : f32 to vector<8x32xf32>
    %46 = arith.addf %45, %44 : vector<8x32xf32>
    %47 = arith.divf %45, %46 : vector<8x32xf32>
    %48 = vector.extract_strided_slice %26 {offsets = [0, 64], sizes = [8, 32], strides = [1, 1]} : vector<8x96xf32> to vector<8x32xf32>
    %49 = vector.extract_strided_slice %31 {offsets = [0, 64], sizes = [8, 32], strides = [1, 1]} : vector<8x96xf32> to vector<8x32xf32>
    %50 = arith.mulf %39, %49 : vector<8x32xf32>
    %51 = arith.addf %48, %50 : vector<8x32xf32>
    %52 = math.tanh %51 : vector<8x32xf32>
    %cst_24 = arith.constant 1.000000e+00 : f32
    %53 = vector.broadcast %cst_24 : f32 to vector<8x32xf32>
    %54 = arith.subf %53, %47 : vector<8x32xf32>
    %55 = arith.mulf %54, %52 : vector<8x32xf32>
    %56 = arith.mulf %47, %21 : vector<8x32xf32>
    %57 = arith.addf %55, %56 : vector<8x32xf32>
    %c0_25 = arith.constant 0 : index
    %c0_26 = arith.constant 0 : index
    %58 = vector.load %arg9[%c0_25, %c0_26] : memref<32x400xf32, #tpu.memory_space<vmem>>, vector<32x400xf32>
    %cst_27 = arith.constant dense<0.000000e+00> : vector<8x400xf32>
    %59 = tpu.matmul %57, %58, %cst_27 {dimension_numbers = #tpu.dot_dimension_numbers<[1], [0], [0], [1], [0, 0, 1, 1], [], []>} : vector<8x32xf32>, vector<32x400xf32>, vector<8x400xf32> -> vector<8x400xf32>
    %c0_28 = arith.constant 0 : index
    %c0_29 = arith.constant 0 : index
    %60 = vector.load %arg10[%c0_28, %c0_29] : memref<1x400xf32, #tpu.memory_space<vmem>>, vector<1x400xf32>
    %61 = vector.broadcast %60 : vector<1x400xf32> to vector<8x400xf32>
    %62 = arith.addf %59, %61 : vector<8x400xf32>
    %cst_30 = arith.constant 0.000000e+00 : f32
    %63 = vector.broadcast %cst_30 : f32 to vector<8x400xf32>
    %64 = arith.maximumf %62, %63 : vector<8x400xf32>
    %c0_31 = arith.constant 0 : index
    %c0_32 = arith.constant 0 : index
    %65 = vector.load %arg11[%c0_31, %c0_32] : memref<400x12xf32, #tpu.memory_space<vmem>>, vector<400x12xf32>
    %cst_33 = arith.constant dense<0.000000e+00> : vector<8x12xf32>
    %66 = tpu.matmul %64, %65, %cst_33 {dimension_numbers = #tpu.dot_dimension_numbers<[1], [0], [0], [1], [0, 0, 1, 1], [], []>} : vector<8x400xf32>, vector<400x12xf32>, vector<8x12xf32> -> vector<8x12xf32>
    %c0_34 = arith.constant 0 : index
    %c0_35 = arith.constant 0 : index
    %67 = vector.load %arg12[%c0_34, %c0_35] : memref<1x12xf32, #tpu.memory_space<vmem>>, vector<1x12xf32>
    %68 = vector.broadcast %67 : vector<1x12xf32> to vector<8x12xf32>
    %69 = arith.addf %66, %68 : vector<8x12xf32>
    %70 = tpu.iota {dimensions = array<i32: 1>} : vector<8x12xi32>
    %cst_36 = arith.constant 0.000000e+00 : f32
    %71 = vector.broadcast %cst_36 : f32 to vector<8x12xf32>
    %72 = arith.maximumf %69, %71 : vector<8x12xf32>
    %73 = math.absf %69 : vector<8x12xf32>
    %cst_37 = arith.constant 0.000000e+00 : f32
    %74 = vector.broadcast %cst_37 : f32 to vector<8x12xf32>
    %75 = arith.subf %74, %73 : vector<8x12xf32>
    %76 = math.exp %75 : vector<8x12xf32>
    %cst_38 = arith.constant 1.000000e+00 : f32
    %77 = vector.broadcast %cst_38 : f32 to vector<8x12xf32>
    %78 = arith.addf %77, %76 : vector<8x12xf32>
    %79 = math.log %78 : vector<8x12xf32>
    %80 = arith.addf %72, %79 : vector<8x12xf32>
    %cst_39 = arith.constant 9.99999974E-5 : f32
    %81 = vector.broadcast %cst_39 : f32 to vector<8x12xf32>
    %82 = arith.addf %80, %81 : vector<8x12xf32>
    %83 = math.sqrt %82 : vector<8x12xf32>
    %c6_i32 = arith.constant 6 : i32
    %84 = vector.broadcast %c6_i32 : i32 to vector<8x12xi32>
    %85 = arith.cmpi slt, %70, %84 : vector<8x12xi32>
    %86 = arith.select %85, %69, %83 : vector<8x12xi1>, vector<8x12xf32>
    %c0_40 = arith.constant 0 : index
    %c0_41 = arith.constant 0 : index
    %87 = vector.load %arg13[%c0_40, %c0_41] : memref<8x12xf32, #tpu.memory_space<vmem>>, vector<8x12xf32>
    tpu.vector_store %arg13[%c0_40, %c0_41], %86 {strides = array<i32>} : memref<8x12xf32, #tpu.memory_space<vmem>>, vector<8x12xf32>,
    return
  }
}

</mosaic_0001>

<bundles_post_ra>
// kernel: tpu_custom_call.1
= control target key start
LH: loop header
LB: loop body
LE: loop exit
PB: predicated region body
PF: predicated region fallthrough
CT: control target
= control target key end

     0   :  { %18 = vsyncpa [#allocation3], 0  ;;  %s1596_s0 = inlined_call_operand.vmem [shape: f32[8,32], index: 0, kind: input, shape index: {}]   ;;  %s1597_s1 = inlined_call_operand.vmem [shape: f32[32,800], index: 1, kind: input, shape index: {}]   ;;  %s1598_s2 = inlined_call_operand.vmem [shape: f32[1,800], index: 2, kind: input, shape index: {}]   ;;  %s1599_s3 = inlined_call_operand.hbm [shape: f32[800,128], index: 3, kind: input, shape index: {}]   ;;  %s1600_s4 = inlined_call_operand.vmem [shape: f32[1,128], index: 4, kind: input, shape index: {}]   ;;  %s1601_s5 = inlined_call_operand.vmem [shape: f32[96,96], index: 5, kind: input, shape index: {}]   ;;  %s1602_s6 = inlined_call_operand.hbm [shape: f32[1,96], index: 6, kind: input, shape index: {}]   ;;  %s1603_s7 = inlined_call_operand.hbm [shape: f32[32,96], index: 7, kind: input, shape index: {}]   ;;  %s1604_s8 = inlined_call_operand.hbm [shape: f32[1,96], index: 8, kind: input, shape index: {}]   ;;  %s1605_s9 = inlined_call_operand.vmem [shape: f32[32,400], index: 9, kind: input, shape index: {}]   ;;  %s1606_s10 = inlined_call_operand.vmem [shape: f32[1,400], index: 10, kind: input, shape index: {}]   ;;  %s1607_s11 = inlined_call_operand.vmem [shape: f32[400,12], index: 11, kind: input, shape index: {}]   ;;  %s1608_s12 = inlined_call_operand.vmem [shape: f32[1,12], index: 12, kind: input, shape index: {}]   ;;  %s1609_s13 = inlined_call_operand.hbm [shape: f32[8,12], index: 13, kind: output, shape index: {}]  }
   0x1   :  { %19 = vsyncpa [#allocation6], 0 }
   0x2   :  { %20 = vsyncpa [#allocation9], 0  ;;  %s50_s27 = sshll.u32 %s1602_s6, 4  ;;  %s51_s27 = int_to_ptr.hbm [resolvable:$true] %s50_s27 }
   0x3   :  { %21 = vsyncpa [#allocation4], 0  ;;  %s1137_s28 = smov [#allocation5]   ;;  %s32_s15 = sshll.u32 %s1599_s3, 4  ;;  %s33_s15 = int_to_ptr.hbm [resolvable:$true] %s32_s15 }
   0x4   :  { %s52_s29 = sshll.u32 %s1137_s28, 4  ;;  %s1138_s16 = smov [#allocation2]   ;;  %s53_s29 = int_to_ptr.vmem [resolvable:$true] %s52_s29 }
   0x5   :  { %55 = dma.hbm_to_vmem [thread:$0]  %s51_s27, 16, %s53_s29, [#allocation6]  }
   0x6   :  { %s34_s17 = sshll.u32 %s1138_s16, 4  ;;  %s1139_s18 = smov 128   ;;  %s35_s17 = int_to_ptr.vmem [resolvable:$true] %s34_s17 }
   0x7   :  { %s1140_s19 = smov 8   ;;  %s60_s6 = sshll.u32 %s1603_s7, 4  ;;  %s61_s6 = int_to_ptr.hbm [resolvable:$true] %s60_s6 }
   0x8   :  { %40 = dma.hbm_to_vmem [thread:$0]  %s33_s15, 12800, %s35_s17, [#allocation3], %s1139_s18, %s1139_s18, %s1140_s19  }
   0x9   :  { %s1141_s22 = smov [#allocation7]   ;;  %s74_s3 = sshll.u32 %s1604_s8, 4  ;;  %s75_s3 = int_to_ptr.hbm [resolvable:$true] %s74_s3 }
   0xa   :  { %s62_s23 = sshll.u32 %s1141_s22, 4  ;;  %s1142_s26 = smov [#allocation8]   ;;  %s63_s23 = int_to_ptr.vmem [resolvable:$true] %s62_s23 }
   0xb   :  { %68 = dma.hbm_to_vmem [thread:$0]  %s61_s6, 512, %s63_s23, [#allocation6], %s1139_s18, %s1139_s18, %s1140_s19  }
   0xc   :  { %s76_s27 = sshll.u32 %s1142_s26, 4  ;;  %s77_s27 = int_to_ptr.vmem [resolvable:$true] %s76_s27 }
   0xd   :  { %79 = dma.hbm_to_vmem [thread:$0]  %s75_s3, 16, %s77_s27, [#allocation9]  }
   0xe   :  { %1129 = dma.done.wait [#allocation3], 12800  }
   0xf   :  { %1130 = vsyncadd [#allocation3], 4294954496 }
  0x10   :  { %1131 = dma.done.wait [#allocation6], 528  }
  0x11   :  { %1132 = vsyncadd [#allocation6], 4294966768 }
  0x12   :  { %1133 = dma.done.wait [#allocation9], 16  }
  0x13   :  { %1134 = vsyncadd [#allocation9], 4294967280  ;;  %v126_v0 = vld [vmem:[%s1597_s1 + $0xa8] sm:$0xff]  ;;  %v119_v1 = vld [vmem:[%s1597_s1 + $0x70] sm:$0xff]  ;;  %vm149_vm0 = vcmask 261120   ;;  %vm569_vm2 = vcmask 785408  }
  0x14   :  { %165 = vmatpush.msra.mxu3 %v126_v0  ;;  %v112_v2 = vld [vmem:[%s1597_s1 + $0x38] sm:$0xff]  ;;  %v121_v4 = vld [vmem:[%s1597_s1 + $0x80] sm:$0xff]  ;;  %v114_v6 = vld [vmem:[%s1597_s1 + $0x48] sm:$0xff]  ;;  %s1145_s24 = smov 96   ;;  %vm836_vm7 = vcmask 130048   ;;  %s953_s7 = sshll.u32 %s1609_s13, 4  ;;  %s954_s7 = int_to_ptr.hbm [resolvable:$true] %s953_s7 }
  0x15   :  { %v128_v3 = vld [vmem:[%s1597_s1 + $0xb8] sm:$0xff]  ;;  %v105_v5 = vld [vmem:[%s1597_s1] sm:$0xff]  ;;  %v130_v8 = vld [vmem:[%s1597_s1 + $0xc8] sm:$0xff]  ;;  %vm944_vm11 = vcmask 97280  }
  0x16   :  { %166 = vmatpush.msra.mxu3 %v119_v1  ;;  %205 = vmatpush.msra.mxu2 %v128_v3  ;;  %v1253_v7 = vld [vmem:[%s1596_s0] sm:$0xff]  ;;  %v127_v9 = vld [vmem:[%s1597_s1 + $0xb0] sm:$0xff]  ;;  %v116_v12 = vld [vmem:[%s1597_s1 + $0x58] sm:$0xff] }
  0x17   :  { %v107_v10 = vld [vmem:[%s1597_s1 + $0x10] sm:$0xff]  ;;  %245 = vmatpush.msra.mxu0 %v130_v8  ;;  %v120_v13 = vld [vmem:[%s1597_s1 + $0x78] sm:$0xff]  ;;  %v109_v15 = vld [vmem:[%s1597_s1 + $0x20] sm:$0xff] }
  0x18   :  { %167 = vmatpush.msra.mxu3 %v112_v2  ;;  %206 = vmatpush.msra.mxu2 %v121_v4  ;;  %v123_v11 = vld [vmem:[%s1597_s1 + $0x90] sm:$0xff]  ;;  %v132_v14 = vld [vmem:[%s1597_s1 + $0xd8] sm:$0xff]  ;;  %v113_v17 = vld [vmem:[%s1597_s1 + $0x40] sm:$0xff] }
  0x19   :  { %246 = vmatpush.msra.mxu0 %v123_v11  ;;  %v131_v16 = vld [vmem:[%s1597_s1 + $0xd0] sm:$0xff]  ;;  %v125_v18 = vld [vmem:[%s1597_s1 + $0xa0] sm:$0xff]  ;;  %v124_v19 = vld [vmem:[%s1597_s1 + $0x98] sm:$0xff] }
  0x1a   :  { %168 = vmatpush.msra.mxu3 %v105_v5  ;;  %207 = vmatpush.msra.mxu2 %v114_v6  ;;  %v106_v20 = vld [vmem:[%s1597_s1 + $0x8] sm:$0xff]  ;;  %v117_v22 = vld [vmem:[%s1597_s1 + $0x60] sm:$0xff]  ;;  %v111_v24 = vld [vmem:[%s1597_s1 + $0x30] sm:$0xff] }
  0x1b   :  { %965 = vmatmul.msk.f32.vlgmr.msra.gmra.mxu3 %vm149_vm0, %v1253_v7  ;;  %247 = vmatpush.msra.mxu0 %v116_v12  ;;  %v118_v21 = vld [vmem:[%s1597_s1 + $0x68] sm:$0xff]  ;;  %v129_v23 = vld [vmem:[%s1597_s1 + $0xc0] sm:$0xff]  ;;  %v115_v27 = vld [vmem:[%s1597_s1 + $0x50] sm:$0xff] }
  0x1c   :  { %185 = vmatpush.msrb.mxu3 %v127_v9  ;;  %208 = vmatpush.msra.mxu2 %v107_v10  ;;  %v110_v25 = vld [vmem:[%s1597_s1 + $0x28] sm:$0xff]  ;;  %v331_v28 = vld [vmem:[#allocation2 + $0xf8] sm:$0xff]  ;;  %v330_v30 = vld [vmem:[#allocation2 + $0xf0] sm:$0xff] }
  0x1d   :  { %967 = vmatmul.msk.f32.vlgmr.msra.gmra.mxu2 %vm149_vm0, %v1253_v7  ;;  %248 = vmatpush.msra.mxu0 %v109_v15  ;;  %v122_v26 = vld [vmem:[%s1597_s1 + $0x88] sm:$0xff]  ;;  %v347_v29 = vld [vmem:[#allocation2 + $0x178] sm:$0xff]  ;;  %v346_v31 = vld [vmem:[#allocation2 + $0x170] sm:$0xff] }
  0x1e   :  { %186 = vmatpush.msrb.mxu3 %v120_v13  ;;  %285 = vmatpush.msrb.mxu2 %v132_v14  ;;  %v108_v32 = vld [vmem:[%s1597_s1 + $0x18] sm:$0xff]  ;;  %v329_v33 = vld [vmem:[#allocation2 + $0xe8] sm:$0xff]  ;;  %v328_v37 = vld [vmem:[#allocation2 + $0xe0] sm:$0xff] }
  0x1f   :  { %265 = vmatpush.msra.mxu1 %v131_v16  ;;  %969 = vmatmul.msk.f32.vlgmr.msra.gmra.mxu0 %vm149_vm0, %v1253_v7  ;;  %v363_v34 = vld [vmem:[#allocation2 + $0x1f8] sm:$0xff]  ;;  %v345_v36 = vld [vmem:[#allocation2 + $0x168] sm:$0xff]  ;;  %v362_v38 = vld [vmem:[#allocation2 + $0x1f0] sm:$0xff] }
  0x20   :  { %187 = vmatpush.msrb.mxu3 %v113_v17  ;;  %286 = vmatpush.msrb.mxu2 %v125_v18  ;;  %v315_v35 = vld [vmem:[#allocation2 + $0x78] sm:$0xff]  ;;  %v314_v39 = vld [vmem:[#allocation2 + $0x70] sm:$0xff]  ;;  %v344_v40 = vld [vmem:[#allocation2 + $0x160] sm:$0xff] }
  0x21   :  { %266 = vmatpush.msra.mxu1 %v124_v19  ;;  %427 = vmatpush.msrb.mxu0 %v331_v28  ;;  %v327_v41 = vld [vmem:[#allocation2 + $0xd8] sm:$0xff]  ;;  %v361_v42 = vld [vmem:[#allocation2 + $0x1e8] sm:$0xff]  ;;  %v326_v45 = vld [vmem:[#allocation2 + $0xd0] sm:$0xff] }
  0x22   :  { %188 = vmatpush.msrb.mxu3 %v106_v20  ;;  %287 = vmatpush.msrb.mxu2 %v118_v21  ;;  %v313_v43 = vld [vmem:[#allocation2 + $0x68] sm:$0xff]  ;;  %v343_v44 = vld [vmem:[#allocation2 + $0x158] sm:$0xff]  ;;  %v360_v46 = vld [vmem:[#allocation2 + $0x1e0] sm:$0xff] }
  0x23   :  { %966 = vmatmul.msk.f32.vlgmr.msrb.gmra.mxu3 %vm149_vm0, %v1253_v7  ;;  %267 = vmatpush.msra.mxu1 %v117_v22  ;;  %v312_v47 = vld [vmem:[#allocation2 + $0x60] sm:$0xff]  ;;  %v342_v48 = vld [vmem:[#allocation2 + $0x150] sm:$0xff]  ;;  %v325_v49 = vld [vmem:[#allocation2 + $0xc8] sm:$0xff] }
  0x24   :  { %225 = vmatpush.msra.mxu3 %v129_v23  ;;  %288 = vmatpush.msrb.mxu2 %v111_v24  ;;  %v359_v50 = vld [vmem:[#allocation2 + $0x1d8] sm:$0xff]  ;;  %v341_v52 = vld [vmem:[#allocation2 + $0x148] sm:$0xff]  ;;  %v324_v53 = vld [vmem:[#allocation2 + $0xc0] sm:$0xff] }
  0x25   :  { %971 = vmatmul.msk.f32.vlgmr.msrb.gmra.mxu2 %vm149_vm0, %v1253_v7  ;;  %268 = vmatpush.msra.mxu1 %v110_v25  ;;  %v311_v51 = vld [vmem:[#allocation2 + $0x58] sm:$0xff]  ;;  %v310_v54 = vld [vmem:[#allocation2 + $0x50] sm:$0xff]  ;;  %v340_v55 = vld [vmem:[#allocation2 + $0x140] sm:$0xff] }
  0x26   :  { %226 = vmatpush.msra.mxu3 %v122_v26  ;;  %970 = vmatmul.msk.f32.vlgmr.msra.gmra.mxu1 %vm149_vm0, %v1253_v7  ;;  %v323_v56 = vld [vmem:[#allocation2 + $0xb8] sm:$0xff]  ;;  %v309_v57 = vld [vmem:[#allocation2 + $0x48] sm:$0xff]  ;;  %v322_v58 = vld [vmem:[#allocation2 + $0xb0] sm:$0xff] }
  0x27   :  { %447 = vmatpush.msrb.mxu1 %v347_v29  ;;  %428 = vmatpush.msrb.mxu0 %v330_v30  ;;  %v308_v59 = vld [vmem:[#allocation2 + $0x40] sm:$0xff]  ;;  %v321_v60 = vld [vmem:[#allocation2 + $0xa8] sm:$0xff]  ;;  %v307_v61 = vld [vmem:[#allocation2 + $0x38] sm:$0xff] }
  0x28   :  { %227 = vmatpush.msra.mxu3 %v115_v27  ;;  %467 = vmatpush.msra.mxu2 %v363_v34  ;;  %v320_v62 = vld [vmem:[#allocation2 + $0xa0] sm:$0xff]  ;;  %v306_v63 = vld [vmem:[#allocation2 + $0x30] sm:$0xff]  ;;  %v319_v0 = vld [vmem:[#allocation2 + $0x98] sm:$0xff] }
  0x29   :  { %448 = vmatpush.msrb.mxu1 %v346_v31  ;;  %429 = vmatpush.msrb.mxu0 %v329_v33  ;;  %v305_v1 = vld [vmem:[#allocation2 + $0x28] sm:$0xff]  ;;  %v318_v2 = vld [vmem:[#allocation2 + $0x90] sm:$0xff]  ;;  %v304_v3 = vld [vmem:[#allocation2 + $0x20] sm:$0xff] }
  0x2a   :  { %228 = vmatpush.msra.mxu3 %v108_v32  ;;  %468 = vmatpush.msra.mxu2 %v362_v38  ;;  %v317_v4 = vld [vmem:[#allocation2 + $0x88] sm:$0xff]  ;;  %v303_v5 = vld [vmem:[#allocation2 + $0x18] sm:$0xff]  ;;  %v316_v6 = vld [vmem:[#allocation2 + $0x80] sm:$0xff] }
  0x2b   :  { %968 = vmatmul.msk.f32.vlgmr.msra.gmra.mxu3 %vm149_vm0, %v1253_v7  ;;  %449 = vmatpush.msrb.mxu1 %v345_v36  ;;  %v302_v7 = vld [vmem:[#allocation2 + $0x10] sm:$0xff]  ;;  %v301_v8 = vld [vmem:[#allocation2 + $0x8] sm:$0xff]  ;;  %v300_v9 = vld [vmem:[#allocation2] sm:$0xff] }
  0x2c   :  { %407 = vmatpush.msrb.mxu3 %v315_v35  ;;  %430 = vmatpush.msrb.mxu0 %v328_v37  ;;  %v379_v10 = vld [vmem:[#allocation2 + $0x278] sm:$0xff]  ;;  %v378_v11 = vld [vmem:[#allocation2 + $0x270] sm:$0xff]  ;;  %v377_v12 = vld [vmem:[#allocation2 + $0x268] sm:$0xff] }
  0x2d   :  { %450 = vmatpush.msrb.mxu1 %v344_v40  ;;  %469 = vmatpush.msra.mxu2 %v361_v42  ;;  %v376_v13 = vld [vmem:[#allocation2 + $0x260] sm:$0xff]  ;;  %v339_v14 = vld [vmem:[#allocation2 + $0x138] sm:$0xff]  ;;  %v358_v15 = vld [vmem:[#allocation2 + $0x1d0] sm:$0xff] }
  0x2e   :  { %408 = vmatpush.msrb.mxu3 %v314_v39  ;;  %431 = vmatpush.msrb.mxu0 %v327_v41  ;;  %v375_v16 = vld [vmem:[#allocation2 + $0x258] sm:$0xff]  ;;  %v338_v18 = vld [vmem:[#allocation2 + $0x130] sm:$0xff]  ;;  %v357_v19 = vld [vmem:[#allocation2 + $0x1c8] sm:$0xff] }
  0x2f   :  { %451 = vmatpush.msrb.mxu1 %v343_v44  ;;  %470 = vmatpush.msra.mxu2 %v360_v46  ;;  %v395_v17 = vld [vmem:[#allocation2 + $0x2f8] sm:$0xff]  ;;  %v374_v20 = vld [vmem:[#allocation2 + $0x250] sm:$0xff]  ;;  %v337_v22 = vld [vmem:[#allocation2 + $0x128] sm:$0xff] }
  0x30   :  { %409 = vmatpush.msrb.mxu3 %v313_v43  ;;  %432 = vmatpush.msrb.mxu0 %v326_v45  ;;  %v394_v21 = vld [vmem:[#allocation2 + $0x2f0] sm:$0xff]  ;;  %v356_v23 = vld [vmem:[#allocation2 + $0x1c0] sm:$0xff]  ;;  %v373_v24 = vld [vmem:[#allocation2 + $0x248] sm:$0xff] }
  0x31   :  { %452 = vmatpush.msrb.mxu1 %v342_v48  ;;  %471 = vmatpush.msra.mxu2 %v359_v50  ;;  %v393_v25 = vld [vmem:[#allocation2 + $0x2e8] sm:$0xff]  ;;  %v336_v26 = vld [vmem:[#allocation2 + $0x120] sm:$0xff]  ;;  %v355_v27 = vld [vmem:[#allocation2 + $0x1b8] sm:$0xff] }
  0x32   :  { %410 = vmatpush.msrb.mxu3 %v312_v47  ;;  %433 = vmatpush.msrb.mxu0 %v325_v49  ;;  %v372_v28 = vld [vmem:[#allocation2 + $0x240] sm:$0xff]  ;;  %v335_v30 = vld [vmem:[#allocation2 + $0x118] sm:$0xff]  ;;  %v354_v31 = vld [vmem:[#allocation2 + $0x1b0] sm:$0xff] }
  0x33   :  { %453 = vmatpush.msrb.mxu1 %v341_v52  ;;  %472 = vmatpush.msra.mxu2 %v358_v15  ;;  %v392_v29 = vld [vmem:[#allocation2 + $0x2e0] sm:$0xff]  ;;  %v371_v32 = vld [vmem:[#allocation2 + $0x238] sm:$0xff]  ;;  %v334_v34 = vld [vmem:[#allocation2 + $0x110] sm:$0xff] }
  0x34   :  { %411 = vmatpush.msrb.mxu3 %v311_v51  ;;  %434 = vmatpush.msrb.mxu0 %v324_v53  ;;  %v391_v33 = vld [vmem:[#allocation2 + $0x2d8] sm:$0xff]  ;;  %v353_v35 = vld [vmem:[#allocation2 + $0x1a8] sm:$0xff]  ;;  %v370_v36 = vld [vmem:[#allocation2 + $0x230] sm:$0xff] }
  0x35   :  { %454 = vmatpush.msrb.mxu1 %v340_v55  ;;  %473 = vmatpush.msra.mxu2 %v357_v19  ;;  %v390_v37 = vld [vmem:[#allocation2 + $0x2d0] sm:$0xff]  ;;  %v333_v38 = vld [vmem:[#allocation2 + $0x108] sm:$0xff]  ;;  %v352_v39 = vld [vmem:[#allocation2 + $0x1a0] sm:$0xff] }
  0x36   :  { %412 = vmatpush.msrb.mxu3 %v310_v54  ;;  %435 = vmatpush.msrb.mxu0 %v323_v56  ;;  %v369_v40 = vld [vmem:[#allocation2 + $0x228] sm:$0xff]  ;;  %v332_v42 = vld [vmem:[#allocation2 + $0x100] sm:$0xff]  ;;  %v351_v43 = vld [vmem:[#allocation2 + $0x198] sm:$0xff] }
  0x37   :  { %455 = vmatpush.msrb.mxu1 %v339_v14  ;;  %474 = vmatpush.msra.mxu2 %v356_v23  ;;  %v389_v41 = vld [vmem:[#allocation2 + $0x2c8] sm:$0xff]  ;;  %v368_v44 = vld [vmem:[#allocation2 + $0x220] sm:$0xff]  ;;  %v350_v46 = vld [vmem:[#allocation2 + $0x190] sm:$0xff] }
  0x38   :  { %413 = vmatpush.msrb.mxu3 %v309_v57  ;;  %436 = vmatpush.msrb.mxu0 %v322_v58  ;;  %v388_v45 = vld [vmem:[#allocation2 + $0x2c0] sm:$0xff]  ;;  %v367_v47 = vld [vmem:[#allocation2 + $0x218] sm:$0xff]  ;;  %v349_v49 = vld [vmem:[#allocation2 + $0x188] sm:$0xff] }
  0x39   :  { %456 = vmatpush.msrb.mxu1 %v338_v18  ;;  %475 = vmatpush.msra.mxu2 %v355_v27  ;;  %v387_v48 = vld [vmem:[#allocation2 + $0x2b8] sm:$0xff]  ;;  %v366_v50 = vld [vmem:[#allocation2 + $0x210] sm:$0xff]  ;;  %v348_v52 = vld [vmem:[#allocation2 + $0x180] sm:$0xff] }
  0x3a   :  { %414 = vmatpush.msrb.mxu3 %v308_v59  ;;  %437 = vmatpush.msrb.mxu0 %v321_v60  ;;  %v386_v51 = vld [vmem:[#allocation2 + $0x2b0] sm:$0xff]  ;;  %v365_v53 = vld [vmem:[#allocation2 + $0x208] sm:$0xff]  ;;  %v364_v55 = vld [vmem:[#allocation2 + $0x200] sm:$0xff] }
  0x3b   :  { %457 = vmatpush.msrb.mxu1 %v337_v22  ;;  %476 = vmatpush.msra.mxu2 %v354_v31  ;;  %v385_v54 = vld [vmem:[#allocation2 + $0x2a8] sm:$0xff]  ;;  %v384_v56 = vld [vmem:[#allocation2 + $0x2a0] sm:$0xff]  ;;  %v383_v57 = vld [vmem:[#allocation2 + $0x298] sm:$0xff] }
  0x3c   :  { %415 = vmatpush.msrb.mxu3 %v307_v61  ;;  %438 = vmatpush.msrb.mxu0 %v320_v62  ;;  %v399_v58 = vld [vmem:[#allocation2 + $0x318] sm:$0xff]  ;;  %v398_v59 = vld [vmem:[#allocation2 + $0x310] sm:$0xff]  ;;  %v397_v61 = vld [vmem:[#allocation2 + $0x308] sm:$0xff] }
  0x3d   :  { %458 = vmatpush.msrb.mxu1 %v336_v26  ;;  %477 = vmatpush.msra.mxu2 %v353_v35  ;;  %v382_v60 = vld [vmem:[#allocation2 + $0x290] sm:$0xff]  ;;  %v133_v62 = vld [vmem:[%s1598_s2] sm:$0x7f] }
  0x3e   :  { %416 = vmatpush.msrb.mxu3 %v306_v63  ;;  %439 = vmatpush.msrb.mxu0 %v319_v0  ;;  %v381_v63 = vld [vmem:[#allocation2 + $0x288] sm:$0xff]  ;;  %v396_v0 = vld [vmem:[#allocation2 + $0x300] sm:$0xff]  ;;  %v141_v14 = vperm.slane %v133_v62, 6  ;;  %v140_v18 = vperm.slane %v133_v62, 5  ;;  %v138_v23 = vperm.slane %v133_v62, 3  ;;  %v563_v31 = vld [vmem:[%s1601_s5 + $0x50] sm:$0xff] }
  0x3f   :  { %459 = vmatpush.msrb.mxu1 %v335_v30  ;;  %478 = vmatpush.msra.mxu2 %v352_v39  ;;  %v564_v30 = vld [vmem:[%s1601_s5 + $0x58] sm:$0xff]  ;;  %v559_v35 = vld [vmem:[%s1601_s5 + $0x30] sm:$0xff] }
  0x40   :  { %417 = vmatpush.msrb.mxu3 %v305_v1  ;;  %440 = vmatpush.msrb.mxu0 %v318_v2  ;;  %v380_v1 = vld [vmem:[#allocation2 + $0x280] sm:$0xff]  ;;  %v135_v2 = vperm.slane %v133_v62, 0  ;;  %v555_v39 = vld [vmem:[%s1601_s5 + $0x10] sm:$0xff] }
  0x41   :  { %460 = vmatpush.msrb.mxu1 %v334_v34  ;;  %479 = vmatpush.msra.mxu2 %v351_v43  ;;  %v560_v34 = vld [vmem:[%s1601_s5 + $0x38] sm:$0xff] }
  0x42   :  { %418 = vmatpush.msrb.mxu3 %v304_v3  ;;  %441 = vmatpush.msrb.mxu0 %v317_v4  ;;  %v137_v3 = vperm.slane %v133_v62, 2 }
  0x43   :  { %461 = vmatpush.msrb.mxu1 %v333_v38  ;;  %480 = vmatpush.msra.mxu2 %v350_v46  ;;  %v556_v38 = vld [vmem:[%s1601_s5 + $0x18] sm:$0xff] }
  0x44   :  { %419 = vmatpush.msrb.mxu3 %v303_v5  ;;  %442 = vmatpush.msrb.mxu0 %v316_v6  ;;  %v139_v6 = vperm.slane %v133_v62, 4 }
  0x45   :  { %462 = vmatpush.msrb.mxu1 %v332_v42  ;;  %481 = vmatpush.msra.mxu2 %v349_v49  ;;  %v991_v42 = vld [vmem:[%s1600_s4] ss:$0 sm:$0xff]  ;;  %s1143_s4 = smov 64  }
  0x46   :  { %420 = vmatpush.msrb.mxu3 %v302_v7  ;;  %507 = vmatpush.msra.mxu0 %v395_v17 }
  0x47   :  { %482 = vmatpush.msra.mxu2 %v348_v52  ;;  %539 = vmatpush.msra.mxu1 %v399_v58 }
  0x48   :  { %421 = vmatpush.msrb.mxu3 %v301_v8  ;;  %508 = vmatpush.msra.mxu0 %v394_v21 }
  0x49   :  { %540 = vmatpush.msra.mxu1 %v398_v59  ;;  %577 = vmatpush.msrb.mxu2 %v564_v30  ;;  %v682_v30 = vld [vmem:[%s1605_s9 + $0x78] sm:$0xff] }
  0x4a   :  { %422 = vmatpush.msrb.mxu3 %v300_v9  ;;  %509 = vmatpush.msra.mxu0 %v393_v25 }
  0x4b   :  { %541 = vmatpush.msra.mxu1 %v397_v61  ;;  %578 = vmatpush.msrb.mxu2 %v563_v31  ;;  %v677_v31 = vld [vmem:[%s1605_s9 + $0x50] sm:$0xff] }
  0x4c   :  { %487 = vmatpush.msra.mxu3 %v379_v10  ;;  %510 = vmatpush.msra.mxu0 %v392_v29 }
  0x4d   :  { %542 = vmatpush.msra.mxu1 %v396_v0  ;;  %v594_v0 = vld [vmem:[#allocation7 + $0x8] sm:$0xff] }
  0x4e   :  { %488 = vmatpush.msra.mxu3 %v378_v11  ;;  %511 = vmatpush.msra.mxu0 %v391_v33  ;;  %v136_v11 = vperm.slane %v133_v62, 1  ;;  %v561_v33 = vld [vmem:[%s1601_s5 + $0x40] sm:$0xff] }
  0x4f   :  { %v596_v62 = vld [vmem:[#allocation7 + $0x18] sm:$0xff] }
  0x50   :  { %489 = vmatpush.msra.mxu3 %v377_v12  ;;  %512 = vmatpush.msra.mxu0 %v390_v37  ;;  %v557_v37 = vld [vmem:[%s1601_s5 + $0x20] sm:$0xff] }
  0x52   :  { %490 = vmatpush.msra.mxu3 %v376_v13  ;;  %513 = vmatpush.msra.mxu0 %v389_v41  ;;  %v553_v41 = vld [vmem:[%s1601_s5] sm:$0xff] }
  0x54   :  { %491 = vmatpush.msra.mxu3 %v375_v16  ;;  %514 = vmatpush.msra.mxu0 %v388_v45 }
  0x56   :  { %492 = vmatpush.msra.mxu3 %v374_v20  ;;  %515 = vmatpush.msra.mxu0 %v387_v48 }
  0x58   :  { %493 = vmatpush.msra.mxu3 %v373_v24  ;;  %516 = vmatpush.msra.mxu0 %v386_v51 }
  0x5a   :  { %494 = vmatpush.msra.mxu3 %v372_v28  ;;  %517 = vmatpush.msra.mxu0 %v385_v54 }
  0x5c   :  { %495 = vmatpush.msra.mxu3 %v371_v32  ;;  %518 = vmatpush.msra.mxu0 %v384_v56  ;;  %v562_v32 = vld [vmem:[%s1601_s5 + $0x48] sm:$0xff]  ;;  %v547_v56 = vlaneseq }
  0x5d   :  { %579 = vmatpush.msrb.mxu2 %v562_v32  ;;  %v675_v32 = vld [vmem:[%s1605_s9 + $0x40] sm:$0xff] }
  0x5e   :  { %496 = vmatpush.msra.mxu3 %v370_v36  ;;  %519 = vmatpush.msra.mxu0 %v383_v57  ;;  %v558_v36 = vld [vmem:[%s1601_s5 + $0x28] sm:$0xff]  ;;  %v1375_v58 = vand.u32 127, %v547_v56  ;;  %v794_v56 = vld [vmem:[%s1607_s11 + $0x60] sm:$0xff] }
  0x5f   :  { %580 = vmatpush.msrb.mxu2 %v561_v33  ;;  %v678_v33 = vld [vmem:[%s1605_s9 + $0x58] sm:$0xff] }
  0x60   :  { %497 = vmatpush.msra.mxu3 %v369_v40  ;;  %520 = vmatpush.msra.mxu0 %v382_v60  ;;  %v554_v40 = vld [vmem:[%s1601_s5 + $0x8] sm:$0xff]  ;;  %vm549_vm1 = vcmp.lt.s32.totalorder %v1375_v58, 96  ;;  %s1144_s5 = smov 32   ;;  %vm942_vm9 = vcmp.lt.s32.totalorder %v1375_v58, 6 }
  0x61   :  { %581 = vmatpush.msrb.mxu2 %v560_v34  ;;  %v673_v34 = vld [vmem:[%s1605_s9 + $0x30] sm:$0xff] }
  0x62   :  { %498 = vmatpush.msra.mxu3 %v368_v44  ;;  %521 = vmatpush.msra.mxu0 %v381_v63  ;;  %v595_v63 = vld [vmem:[#allocation7 + $0x10] sm:$0xff] }
  0x63   :  { %582 = vmatpush.msrb.mxu2 %v559_v35  ;;  %v671_v35 = vld [vmem:[%s1605_s9 + $0x20] sm:$0xff] }
  0x64   :  { %499 = vmatpush.msra.mxu3 %v367_v47  ;;  %522 = vmatpush.msra.mxu0 %v380_v1  ;;  %v593_v1 = vld [vmem:[#allocation7] sm:$0xff] }
  0x65   :  { %583 = vmatpush.msrb.mxu2 %v558_v36  ;;  %v674_v36 = vld [vmem:[%s1605_s9 + $0x38] sm:$0xff] }
  0x66   :  { %500 = vmatpush.msra.mxu3 %v366_v50 }
  0x67   :  { %584 = vmatpush.msrb.mxu2 %v557_v37  ;;  %v669_v37 = vld [vmem:[%s1605_s9 + $0x10] sm:$0xff] }
  0x68   :  { %501 = vmatpush.msra.mxu3 %v365_v53 }
  0x69   :  { %585 = vmatpush.msrb.mxu2 %v556_v38  ;;  %v667_v38 = vld [vmem:[%s1605_s9] sm:$0xff] }
  0x6a   :  { %502 = vmatpush.msra.mxu3 %v364_v55 }
  0x6b   :  { %586 = vmatpush.msrb.mxu2 %v555_v39  ;;  %v670_v39 = vld [vmem:[%s1605_s9 + $0x18] sm:$0xff] }
  0x6d   :  { %587 = vmatpush.msrb.mxu2 %v554_v40 }
  0x6f   :  { %588 = vmatpush.msrb.mxu2 %v553_v41 }
  0x9c   :  { %v250_v8 = vpop.f32.mrf.mxu0 }
  0x9d   :  { %v251_v13 = vadd.f32 %v250_v8, %v139_v6  ;;  %v992_v6 = vld [vmem:[#allocation5] ss:$0 sm:$0xff] }
  0x9e   :  { %v170_v4 = vpop.f32.mrf.mxu3 }
  0x9f   :  { %v171_v5 = vadd.f32 %v170_v4, %v135_v2  ;;  %v297_v17 = vmax.f32 %v251_v13, 0.0 }
  0xa0   :  { %v210_v7 = vpop.f32.mrf.mxu2 }
  0xa1   :  { %v293_v9 = vmax.f32 %v171_v5, 0.0  ;;  %v211_v10 = vadd.f32 %v210_v7, %v137_v3  ;;  %v993_v3 = vld [vmem:[#allocation8] ss:$0 sm:$0xff] }
  0xa3   :  { %423 = vmatmul.f32.vlgmr.msrb.gmra.mxu3 %v293_v9  ;;  %v295_v12 = vmax.f32 %v211_v10, 0.0  ;;  %v270_v19 = vpop.f32.mrf.mxu1 }
  0xa4   :  { %v271_v24 = vadd.f32 %v270_v19, %v140_v18  ;;  %770 = vmatpush.msrb.mxu3 %v682_v30  ;;  %v801_v30 = vld [vmem:[%s1607_s11 + $0x98] sm:$0xff] }
  0xa5   :  { %463 = vmatmul.f32.vlgmr.msrb.gmra.mxu1 %v295_v12 }
  0xa6   :  { %v190_v15 = vpop.f32.mrf.mxu3  ;;  %v298_v28 = vmax.f32 %v271_v24, 0.0  ;;  %617 = vmatpush.msrb.mxu1 %v596_v62  ;;  %771 = vmatpush.msrb.mxu3 %v678_v33  ;;  %v824_v62 = vld [vmem:[%s1607_s11 + $0x150] sm:$0xff]  ;;  %v815_v33 = vld [vmem:[%s1607_s11 + $0x108] sm:$0xff] }
  0xa7   :  { %v191_v16 = vadd.f32 %v190_v15, %v136_v11 }
  0xa8   :  { %v290_v20 = vpop.f32.mrf.mxu2  ;;  %618 = vmatpush.msrb.mxu1 %v595_v63  ;;  %772 = vmatpush.msrb.mxu3 %v674_v36  ;;  %v791_v63 = vld [vmem:[%s1607_s11 + $0x48] sm:$0xff]  ;;  %v814_v36 = vld [vmem:[%s1607_s11 + $0x100] sm:$0xff] }
  0xa9   :  { %v294_v21 = vmax.f32 %v191_v16, 0.0  ;;  %v291_v22 = vadd.f32 %v290_v20, %v141_v14 }
  0xaa   :  { %619 = vmatpush.msrb.mxu1 %v594_v0  ;;  %773 = vmatpush.msrb.mxu3 %v670_v39  ;;  %v823_v0 = vld [vmem:[%s1607_s11 + $0x148] sm:$0xff] }
  0xab   :  { %443 = vmatmul.f32.vlgmr.msrb.gmra.mxu0 %v294_v21  ;;  %503 = vmatmul.f32.vlgmr.msra.gmra.mxu3 %v297_v17  ;;  %v299_v25 = vmax.f32 %v291_v22, 0.0 }
  0xac   :  { %620 = vmatpush.msrb.mxu1 %v593_v1  ;;  %v790_v1 = vld [vmem:[%s1607_s11 + $0x40] sm:$0xff] }
  0xad   :  { %972 = vmatmul.msk.f32.vlgmr.msra.gmra.mxu1 %vm149_vm0, %v299_v25 }
  0xae   :  { %v230_v26 = vpop.f32.mrf.mxu3 }
  0xaf   :  { %v231_v27 = vadd.f32 %v230_v26, %v138_v23 }
  0xb1   :  { %v296_v29 = vmax.f32 %v231_v27, 0.0 }
  0xb3   :  { %483 = vmatmul.f32.vlgmr.msra.gmra.mxu2 %v296_v29  ;;  %523 = vmatmul.f32.vlgmr.msra.gmra.mxu0 %v298_v28  ;;  %v681_v28 = vld [vmem:[%s1605_s9 + $0x70] sm:$0xff]  ;;  %v679_v29 = vld [vmem:[%s1605_s9 + $0x60] sm:$0xff] }
  0xb4   :  { %750 = vmatpush.msra.mxu2 %v681_v28  ;;  %710 = vmatpush.msra.mxu1 %v679_v29  ;;  %v817_v28 = vld [vmem:[%s1607_s11 + $0x118] sm:$0xff]  ;;  %v831_v29 = vld [vmem:[%s1607_s11 + $0x188] sm:$0xff] }
  0xb5   :  { %914 = vmatpush.msra.mxu3 %v831_v29 }
  0xb6   :  { %751 = vmatpush.msra.mxu2 %v677_v31  ;;  %711 = vmatpush.msra.mxu1 %v675_v32  ;;  %v816_v31 = vld [vmem:[%s1607_s11 + $0x110] sm:$0xff] }
  0xb7   :  { %v800_v32 = vld [vmem:[%s1607_s11 + $0x90] sm:$0xff] }
  0xb8   :  { %752 = vmatpush.msra.mxu2 %v673_v34  ;;  %712 = vmatpush.msra.mxu1 %v671_v35  ;;  %v830_v34 = vld [vmem:[%s1607_s11 + $0x180] sm:$0xff]  ;;  %v799_v35 = vld [vmem:[%s1607_s11 + $0x88] sm:$0xff] }
  0xb9   :  { %915 = vmatpush.msra.mxu3 %v830_v34 }
  0xba   :  { %753 = vmatpush.msra.mxu2 %v669_v37  ;;  %713 = vmatpush.msra.mxu1 %v667_v38  ;;  %v798_v37 = vld [vmem:[%s1607_s11 + $0x80] sm:$0xff] }
  0xbb   :  { %v683_v38 = vld [vmem:[%s1606_s10] sm:$0xf] }
  0xbc   :  { %v685_v39 = vperm.slane %v683_v38, 0 }
 0x122   :  { %v464_v47 = vpop.f32.mrf.mxu1 }
 0x126   :  { %v424_v43 = vpop.f32.mrf.mxu3 }
 0x127   :  { %v425_v44 = vadd.f32 %v991_v42, %v424_v43 }
 0x128   :  { %v444_v45 = vpop.f32.mrf.mxu0 }
 0x129   :  { %v445_v46 = vadd.f32 %v444_v45, %v425_v44 }
 0x12a   :  { %v544_v54 = vpop.f32.mrf.mxu1 }
 0x12b   :  { %v465_v48 = vadd.f32 %v464_v47, %v445_v46  ;;  %v680_v46 = vld [vmem:[%s1605_s9 + $0x68] sm:$0xff] }
 0x12c   :  { %v676_v47 = vld [vmem:[%s1605_s9 + $0x48] sm:$0xff] }
 0x12e   :  { %v504_v50 = vpop.f32.mrf.mxu3 }
 0x130   :  { %v524_v52 = vpop.f32.mrf.mxu0 }
 0x136   :  { %v484_v49 = vpop.f32.mrf.mxu2 }
 0x137   :  { %v485_v51 = vadd.f32 %v484_v49, %v465_v48  ;;  %v672_v48 = vld [vmem:[%s1605_s9 + $0x28] sm:$0xff] }
 0x138   :  { %v668_v49 = vld [vmem:[%s1605_s9 + $0x8] sm:$0xff] }
 0x139   :  { %v505_v53 = vadd.f32 %v504_v50, %v485_v51  ;;  %v797_v50 = vld [vmem:[%s1607_s11 + $0x78] sm:$0xff]  ;;  %v796_v51 = vld [vmem:[%s1607_s11 + $0x70] sm:$0xff] }
 0x13a   :  { %840 = vmatpush.msrb.mxu0 %v797_v50 }
 0x13b   :  { %v525_v55 = vadd.f32 %v524_v52, %v505_v53  ;;  %v829_v52 = vld [vmem:[%s1607_s11 + $0x178] sm:$0xff]  ;;  %v795_v53 = vld [vmem:[%s1607_s11 + $0x68] sm:$0xff] }
 0x13c   :  { %841 = vmatpush.msrb.mxu0 %v796_v51 }
 0x13d   :  { %v545_v57 = vadd.f32 %v544_v54, %v525_v55  ;;  %v828_v54 = vld [vmem:[%s1607_s11 + $0x170] sm:$0xff]  ;;  %v827_v55 = vld [vmem:[%s1607_s11 + $0x168] sm:$0xff] }
 0x13e   :  { %842 = vmatpush.msrb.mxu0 %v795_v53 }
 0x13f   :  { %995 = vtanh.f32 %v545_v57  ;;  %v550_v59 = vmax.f32 %v545_v57, 0.0  ;;  %v826_v57 = vld [vmem:[%s1607_s11 + $0x160] sm:$0xff] }
 0x140   :  { %843 = vmatpush.msrb.mxu0 %v794_v56 }
 0x145   :  { %v996_v60 = vpop.eup %995 }
 0x146   :  { %v552_v61 = vsel %vm549_vm1, %v550_v59, %v996_v60  ;;  %v793_v59 = vld [vmem:[%s1607_s11 + $0x58] sm:$0xff] }
 0x147   :  { %662 = vrot.lane.b32.xlu2 %v552_v61, %s1143_s4  ;;  %601 = vrot.lane.b32.xlu0 %v552_v61, %s1144_s5  ;;  %v825_v60 = vld [vmem:[%s1607_s11 + $0x158] sm:$0xff] }
 0x148   :  { %973 = vmatmul.msk.f32.vlgmr.msrb.gmra.mxu2 %vm569_vm2, %v552_v61  ;;  %v792_v61 = vld [vmem:[%s1607_s11 + $0x50] sm:$0xff]  ;;  %844 = vmatpush.msrb.mxu0 %v793_v59 }
 0x149   :  { %880 = vmatpush.msrb.mxu2 %v829_v52 }
 0x14a   :  { %845 = vmatpush.msrb.mxu0 %v792_v61 }
 0x14b   :  { %881 = vmatpush.msrb.mxu2 %v828_v54 }
 0x14c   :  { %846 = vmatpush.msrb.mxu0 %v791_v63 }
 0x14d   :  { %882 = vmatpush.msrb.mxu2 %v827_v55  ;;  %v994_v55 = vld [vmem:[%s1608_s12] ss:$0 sm:$0xff]  ;;  %s1146_s12 = smov [#allocation10]  }
 0x14e   :  { %847 = vmatpush.msrb.mxu0 %v790_v1  ;;  %s951_s3 = sshll.u32 %s1146_s12, 4  ;;  %s952_s3 = int_to_ptr.vmem [resolvable:$true] %s951_s3 }
 0x14f   :  { %883 = vmatpush.msrb.mxu2 %v826_v57 }
 0x151   :  { %884 = vmatpush.msrb.mxu2 %v825_v60 }
 0x153   :  { %885 = vmatpush.msrb.mxu2 %v824_v62 }
 0x155   :  { %886 = vmatpush.msrb.mxu2 %v823_v0 }
 0x1a1   :  { %v663_v41 = vpop.permute.xlu2 %662 }
 0x1b9   :  { %v602_v2 = vpop.permute.xlu0 %601 }
 0x1ba   :  { %974 = vmatmul.msk.f32.vlgmr.msrb.gmra.mxu1 %vm149_vm0, %v602_v2  ;;  %v822_v2 = vld [vmem:[%s1607_s11 + $0x140] sm:$0xff] }
 0x1bb   :  { %730 = vmatpush.msrb.mxu1 %v680_v46  ;;  %887 = vmatpush.msrb.mxu2 %v822_v2 }
 0x1bd   :  { %731 = vmatpush.msrb.mxu1 %v676_v47 }
 0x1bf   :  { %732 = vmatpush.msrb.mxu1 %v672_v48 }
 0x1c1   :  { %733 = vmatpush.msrb.mxu1 %v668_v49 }
 0x1cb   :  { %v590_v7 = vpop.f32.mrf.mxu2 }
 0x1cc   :  { %v591_v8 = vadd.f32 %v992_v6, %v590_v7  ;;  %v820_v6 = vld [vmem:[%s1607_s11 + $0x130] sm:$0xff]  ;;  %v787_v7 = vld [vmem:[%s1607_s11 + $0x28] sm:$0xff] }
 0x237   :  { %v622_v4 = vpop.f32.mrf.mxu1 }
 0x238   :  { %v623_v5 = vadd.f32 %v993_v3, %v622_v4  ;;  %v789_v3 = vld [vmem:[%s1607_s11 + $0x38] sm:$0xff] }
 0x239   :  { %v821_v4 = vld [vmem:[%s1607_s11 + $0x138] sm:$0xff]  ;;  %848 = vmatpush.msrb.mxu0 %v789_v3 }
 0x23a   :  { %646 = vrot.lane.b32.xlu0 %v623_v5, %s1143_s4  ;;  %v625_v9 = vadd.f32 %v623_v5, %v591_v8  ;;  %v788_v5 = vld [vmem:[%s1607_s11 + $0x30] sm:$0xff]  ;;  %888 = vmatpush.msrb.mxu2 %v821_v4 }
 0x23b   :  { %849 = vmatpush.msrb.mxu0 %v788_v5 }
 0x23c   :  { %v975_v10 = vmul.f32 -1.442695, %v625_v9  ;;  %889 = vmatpush.msrb.mxu2 %v820_v6  ;;  %v813_v9 = vld [vmem:[%s1607_s11 + $0xf8] sm:$0xff] }
 0x23d   :  { %850 = vmatpush.msrb.mxu0 %v787_v7 }
 0x23e   :  { %997 = vpow2.f32 %v975_v10 }
 0x244   :  { %v998_v11 = vpop.eup %997 }
 0x245   :  { %v629_v12 = vadd.f32 1.0, %v998_v11  ;;  %v785_v11 = vld [vmem:[%s1607_s11 + $0x18] sm:$0xff] }
 0x247   :  { %999 = vrcp.f32 %v629_v12  ;;  %v641_v18 = vand.u32 2147483648, %v629_v12  ;;  %vm635_vm4 = vweird.f32 %v629_v12  ;;  %v639_v19 = vand.u32 2147483647, %v629_v12 }
 0x249   :  { %v642_v21 = vor.u32 1.1754944e-38, %v641_v18  ;;  %vm640_vm6 = vcmp.eq.f32.partialorder %v639_v19, 8.507059e+37  ;;  %v806_v18 = vld [vmem:[%s1607_s11 + $0xc0] sm:$0xff]  ;;  %v805_v19 = vld [vmem:[%s1607_s11 + $0xb8] sm:$0xff] }
 0x24d   :  { %v1000_v13 = vpop.eup %999 }
 0x24e   :  { %v631_v14 = vmul.f32 %v1000_v13, %v629_v12  ;;  %vm636_vm3 = vweird.f32 %v1000_v13  ;;  %v812_v12 = vld [vmem:[%s1607_s11 + $0xf0] sm:$0xff] }
 0x24f   :  { %vm637_vm5 = vmor %vm635_vm4, %vm636_vm3 }
 0x250   :  { %v632_v15 = vsub.f32 1.0, %v631_v14  ;;  %v810_v14 = vld [vmem:[%s1607_s11 + $0xe0] sm:$0xff] }
 0x252   :  { %v633_v16 = vmul.f32 %v1000_v13, %v632_v15  ;;  %v809_v15 = vld [vmem:[%s1607_s11 + $0xd8] sm:$0xff] }
 0x254   :  { %v634_v17 = vadd.f32 %v1000_v13, %v633_v16  ;;  %v808_v16 = vld [vmem:[%s1607_s11 + $0xd0] sm:$0xff] }
 0x256   :  { %v638_v20 = vsel %vm637_vm5, %v1000_v13, %v634_v17  ;;  %v811_v13 = vld [vmem:[%s1607_s11 + $0xe8] sm:$0xff] }
 0x257   :  { %v643_v23 = vsel %vm640_vm6, %v642_v21, %v638_v20  ;;  %v807_v17 = vld [vmem:[%s1607_s11 + $0xc8] sm:$0xff]  ;;  %v784_v20 = vld [vmem:[%s1607_s11 + $0x10] sm:$0xff] }
 0x258   :  { %v656_v40 = vsub.f32 1.0, %v643_v23  ;;  %v665_v43 = vmul.f32 %v663_v41, %v643_v23  ;;  %v804_v21 = vld [vmem:[%s1607_s11 + $0xb0] sm:$0xff] }
 0x2ac   :  { %v647_v22 = vpop.permute.xlu0 %646 }
 0x2ad   :  { %v649_v24 = vmul.f32 %v647_v22, %v643_v23  ;;  %v819_v22 = vld [vmem:[%s1607_s11 + $0x128] sm:$0xff] }
 0x2ae   :  { %890 = vmatpush.msrb.mxu2 %v819_v22  ;;  %v783_v23 = vld [vmem:[%s1607_s11 + $0x8] sm:$0xff] }
 0x2af   :  { %651 = vrot.lane.b32.xlu1 %v649_v24, %s1143_s4  ;;  %v803_v24 = vld [vmem:[%s1607_s11 + $0xa8] sm:$0xff] }
 0x321   :  { %v652_v25 = vpop.permute.xlu1 %651 }
 0x322   :  { %v654_v26 = vadd.f32 %v652_v25, %v591_v8  ;;  %v786_v8 = vld [vmem:[%s1607_s11 + $0x20] sm:$0xff] }
 0x323   :  { %851 = vmatpush.msrb.mxu0 %v786_v8  ;;  %v818_v25 = vld [vmem:[%s1607_s11 + $0x120] sm:$0xff] }
 0x324   :  { %1001 = vtanh.f32 %v654_v26  ;;  %v782_v26 = vld [vmem:[%s1607_s11] sm:$0xff]  ;;  %891 = vmatpush.msrb.mxu2 %v818_v25 }
 0x325   :  { %852 = vmatpush.msrb.mxu0 %v785_v11 }
 0x326   :  { %892 = vmatpush.msrb.mxu2 %v817_v28 }
 0x327   :  { %853 = vmatpush.msrb.mxu0 %v784_v20 }
 0x328   :  { %893 = vmatpush.msrb.mxu2 %v816_v31 }
 0x329   :  { %854 = vmatpush.msrb.mxu0 %v783_v23 }
 0x32a   :  { %v1002_v27 = vpop.eup %1001  ;;  %894 = vmatpush.msrb.mxu2 %v815_v33 }
 0x32b   :  { %658 = vrot.lane.b32.xlu1 %v1002_v27, %s1145_s24  ;;  %v802_v27 = vld [vmem:[%s1607_s11 + $0xa0] sm:$0xff]  ;;  %855 = vmatpush.msrb.mxu0 %v782_v26 }
 0x32c   :  { %895 = vmatpush.msrb.mxu2 %v814_v36 }
 0x39d   :  { %v659_v42 = vpop.permute.xlu1 %658 }
 0x39e   :  { %v661_v44 = vmul.f32 %v659_v42, %v656_v40 }
 0x3a0   :  { %v666_v45 = vadd.f32 %v665_v43, %v661_v44  ;;  %v687_v43 = vperm.slane %v683_v38, 2  ;;  %v688_v44 = vperm.slane %v683_v38, 3 }
 0x3a2   :  { %694 = vrot.lane.b32.xlu2 %v666_v45, %s1145_s24  ;;  %v686_v45 = vperm.slane %v683_v38, 1 }
 0x3fc   :  { %v695_v10 = vpop.permute.xlu2 %694 }
 0x3fd   :  { %976 = vmatmul.msk.f32.vlgmr.msra.gmra.mxu1 %vm149_vm0, %v695_v10  ;;  %978 = vmatmul.msk.f32.vlgmr.msra.gmra.mxu2 %vm149_vm0, %v695_v10 }
 0x3fe   :  { %979 = vmatmul.msk.f32.vlgmr.msrb.gmra.mxu3 %vm149_vm0, %v695_v10  ;;  %860 = vmatpush.msra.mxu1 %v813_v9 }
 0x400   :  { %861 = vmatpush.msra.mxu1 %v812_v12 }
 0x402   :  { %862 = vmatpush.msra.mxu1 %v811_v13 }
 0x404   :  { %863 = vmatpush.msra.mxu1 %v810_v14 }
 0x405   :  { %977 = vmatmul.msk.f32.vlgmr.msrb.gmra.mxu1 %vm149_vm0, %v695_v10 }
 0x406   :  { %864 = vmatpush.msra.mxu1 %v809_v15 }
 0x408   :  { %865 = vmatpush.msra.mxu1 %v808_v16 }
 0x40a   :  { %866 = vmatpush.msra.mxu1 %v807_v17 }
 0x40c   :  { %867 = vmatpush.msra.mxu1 %v806_v18 }
 0x40e   :  { %868 = vmatpush.msra.mxu1 %v805_v19 }
 0x410   :  { %869 = vmatpush.msra.mxu1 %v804_v21 }
 0x412   :  { %870 = vmatpush.msra.mxu1 %v803_v24 }
 0x414   :  { %871 = vmatpush.msra.mxu1 %v802_v27 }
 0x416   :  { %872 = vmatpush.msra.mxu1 %v801_v30 }
 0x418   :  { %873 = vmatpush.msra.mxu1 %v800_v32 }
 0x41a   :  { %874 = vmatpush.msra.mxu1 %v799_v35 }
 0x41c   :  { %875 = vmatpush.msra.mxu1 %v798_v37 }
 0x47a   :  { %v715_v40 = vpop.f32.mrf.mxu1 }
 0x47b   :  { %v716_v41 = vadd.f32 %v715_v40, %v685_v39 }
 0x47d   :  { %v778_v42 = vmax.f32 %v716_v41, 0.0 }
 0x47f   :  { %856 = vmatmul.f32.vlgmr.msrb.gmra.mxu0 %v778_v42 }
 0x480   :  { %v755_v46 = vpop.f32.mrf.mxu2 }
 0x481   :  { %v756_v47 = vadd.f32 %v755_v46, %v687_v43  ;;  %v775_v48 = vpop.f32.mrf.mxu3 }
 0x482   :  { %v776_v49 = vadd.f32 %v775_v48, %v688_v44  ;;  %v735_v50 = vpop.f32.mrf.mxu1 }
 0x483   :  { %v780_v51 = vmax.f32 %v756_v47, 0.0  ;;  %v736_v52 = vadd.f32 %v735_v50, %v686_v45 }
 0x484   :  { %v781_v53 = vmax.f32 %v776_v49, 0.0 }
 0x485   :  { %v779_v54 = vmax.f32 %v736_v52, 0.0  ;;  %896 = vmatmul.f32.vlgmr.msrb.gmra.mxu2 %v780_v51 }
 0x486   :  { %980 = vmatmul.msk.f32.vlgmr.msra.gmra.mxu3 %vm836_vm7, %v781_v53 }
 0x487   :  { %876 = vmatmul.f32.vlgmr.msra.gmra.mxu1 %v779_v54 }
 0x4fc   :  { %v857_v56 = vpop.f32.mrf.mxu0 }
 0x4fd   :  { %v858_v59 = vadd.f32 %v994_v55, %v857_v56 }
 0x504   :  { %v877_v57 = vpop.f32.mrf.mxu1 }
 0x505   :  { %v878_v60 = vadd.f32 %v877_v57, %v858_v59 }
 0x508   :  { %v897_v61 = vpop.f32.mrf.mxu2 }
 0x509   :  { %v898_v62 = vadd.f32 %v897_v61, %v878_v60  ;;  %v917_v63 = vpop.f32.mrf.mxu3 }
 0x50b   :  { %v918_v0 = vadd.f32 %v917_v63, %v898_v62 }
 0x50d   :  { %v921_v1 = vand.u32 2147483647, %v918_v0  ;;  %v920_v7 = vmax.f32 %v918_v0, 0.0 }
 0x50f   :  { %v922_v2 = vsub.f32 0.0, %v921_v1 }
 0x511   :  { %v923_v3 = vmul.f32 1.442695, %v922_v2 }
 0x513   :  { %1003 = vpow2.f32 %v923_v3 }
 0x519   :  { %v1004_v4 = vpop.eup %1003 }
 0x51a   :  { %v925_v5 = vadd.f32 1.0, %v1004_v4 }
 0x51c   :  { %1005 = vlog2.f32 %v925_v5 }
 0x522   :  { %v1006_v6 = vpop.eup %1005 }
 0x523   :  { %v927_v8 = vmul.f32 0.6931472, %v1006_v6 }
 0x525   :  { %v928_v9 = vadd.f32 %v927_v8, %v920_v7 }
 0x527   :  { %v929_v10 = vadd.f32 0.0001, %v928_v9 }
 0x529   :  { %1007 = vrsqrt.f32 %v929_v10  ;;  %vm937_vm8 = vcmp.eq.f32.partialorder %v929_v10, inf  ;;  %v940_v18 = vand.u32 2147483648, %v929_v10  ;;  %vm939_vm10 = vcmp.eq.f32.partialorder %v929_v10, 0.0 }
 0x52f   :  { %v1008_v11 = vpop.eup %1007 }
 0x530   :  { %v931_v12 = vmul.f32 %v1008_v11, %v929_v10 }
 0x532   :  { %v932_v13 = vmul.f32 %v1008_v11, %v931_v12 }
 0x534   :  { %v933_v14 = vmul.f32 0.5, %v932_v13 }
 0x536   :  { %v934_v15 = vsub.f32 1.5, %v933_v14 }
 0x538   :  { %v935_v16 = vmul.f32 %v1008_v11, %v934_v15 }
 0x53a   :  { %v936_v17 = vmul.f32 %v935_v16, %v929_v10 }
 0x53c   :  { %v938_v19 = vsel %vm937_vm8, %v929_v10, %v936_v17 }
 0x53d   :  { %v941_v20 = vsel %vm939_vm10, %v940_v18, %v938_v19 }
 0x53e   :  { %v943_v21 = vsel %vm942_vm9, %v918_v0, %v941_v20 }
 0x53f   :  { %945 = vst.msk [vmem:[#allocation10] sm:$0xff] %vm944_vm11, %v943_v21 }
 0x540   :  { %956 = dma.vmem_to_hbm [thread:$0]  %s952_s3, 128, %s954_s7, [#allocation4]  }
 0x541   :  { %1135 = dma.done.wait [#allocation4], 128  }
 0x542   :  { %1136 = vsyncadd [#allocation4], 4294967168 }
 0x543   :  { %961 = vsyncpa [#allocation3], 1 }
 0x544   :  { %962 = vsyncpa [#allocation6], 1 }
 0x545   :  { %963 = vsyncpa [#allocation9], 1 }
 0x546   :  { %964 = vsyncpa [#allocation4], 1 }

</bundles_post_ra>
